<compile_context>
chip_gen: v7x
topology: tpu7x:2x2x1
jax: 0.10.0
libtpu: 0.0.40
codegen_flags: <defaults>
</compile_context>

<pallas_src>
import jax
import jax.numpy as jnp
from jax.experimental import pallas as pl
from jax.experimental.pallas import tpu as pltpu


def temporal_attention_kernel(h_ref, w_ref, b_ref, o_ref):
    # h_ref: (bb, F*T)    activation tile, native dtype, lane-dense
    # w_ref: (F*T, T*K)   block-diagonal weight (VMEM-resident, constant index_map)
    # b_ref: (1, T*K)     bias, flattened as [t*K + k]
    # o_ref: (bb, T*K)    sigmoid(logits), already in the final (t, k) minor order
    h = h_ref[...].astype(jnp.float32)
    logits = jnp.dot(h, w_ref[...],
                     preferred_element_type=jnp.float32,
                     precision=jax.lax.Precision.HIGHEST)
    logits = logits + b_ref[...]
    # Exact sigmoid via a single EUP transcendental (numerically safe for any logit).
    o_ref[...] = 0.5 * (jnp.tanh(0.5 * logits) + 1.0)


def _round_up(x, m):
    return ((x + m - 1) // m) * m


def _pick_batch_block(B, F, T, K, act_bytes):
    """Largest batch tile that fits a conservative VMEM budget (v5e 16 MiB scoped
    default is the tightest), sublane-aligned, capped at 2048 rows, and split into
    >= 2 grid steps when B allows it (keeps both v7x TensorCores busy)."""
    budget = 12 << 20                                     # bytes, with headroom
    fixed = 2 * (F * T) * (T * K) * 4 + 2 * (T * K) * 4   # resident W_big + bias
    per_row = F * T * (2 * act_bytes + 4) + 3 * (T * K) * 4
    bb = max(8, (budget - fixed) // per_row)
    bb = int(min(bb, 2048))
    if B >= 2 * bb:
        pass                                              # plenty of grid steps
    elif B >= 16:
        bb = _round_up(pl.cdiv(B, 2), 8)                  # balanced 2(+) steps
    else:
        bb = 8
    return int(max(8, (bb // 8) * 8))


def temporal_attention_forward(h_ens, weights, biases, *, batch_block=None):
    """Pallas TemporalAttention forward.

    h_ens:   (B, num_in_feat, t_dim)              -- native PyTorch activation layout
    weights: (num_cls_tasks, t_dim, num_in_feat)  -- weights[k, t] = attn_k[t].weight.squeeze(0)
    biases:  (num_cls_tasks, t_dim)               -- biases[k, t]  = attn_k[t].bias.squeeze(0)
    returns: (B, t_dim, num_cls_tasks) float32 (matches torch.zeros default dtype)
    """
    B, F, T = h_ens.shape
    K, T_w, F_w = weights.shape
    assert (T_w, F_w) == (T, F) and biases.shape == (K, T)

    # Free relabel of the activations: (B, F, T) -> (B, F*T), contiguous, no copy.
    h_flat = jnp.reshape(h_ens, (B, F * T))

    # One-off tiny parameter prep: block-diagonal weight so the whole per-(task,
    # timestep) Linear bank is a single MXU matmul.
    #   W_big[f*T + t, t*K + k] = weights[k, t, f]
    w_ftk = jnp.transpose(weights, (2, 1, 0)).astype(jnp.float32)        # (F, T, K)
    eye_t = jnp.eye(T, dtype=jnp.float32)
    w_big = jnp.einsum('ftk,tu->ftuk', w_ftk, eye_t).reshape(F * T, T * K)
    b_flat = jnp.transpose(biases).astype(jnp.float32).reshape(1, T * K)  # [t*K + k]

    act_bytes = jnp.dtype(h_ens.dtype).itemsize
    bb = batch_block if batch_block is not None else _pick_batch_block(B, F, T, K, act_bytes)
    grid = (pl.cdiv(B, bb),)   # ragged last tile handled by Pallas block clipping

    out_flat = pl.pallas_call(
        temporal_attention_kernel,
        out_shape=jax.ShapeDtypeStruct((B, T * K), jnp.float32),
        grid=grid,
        in_specs=[
            pl.BlockSpec((bb, F * T), lambda i: (i, 0)),      # streamed batch tile
            pl.BlockSpec((F * T, T * K), lambda i: (0, 0)),   # VMEM-resident params
            pl.BlockSpec((1, T * K), lambda i: (0, 0)),       # VMEM-resident bias
        ],
        out_specs=pl.BlockSpec((bb, T * K), lambda i: (i, 0)),
        compiler_params=pltpu.CompilerParams(
            dimension_semantics=("parallel",),                # no carried state on batch
            vmem_limit_bytes=32 << 20),
    )(h_flat, w_big, b_flat)

    # Free reshape (no data movement): (B, T*K) -> (B, T, K), PyTorch output layout.
    return out_flat.reshape(B, T, K)


def reference(h_ens, weights, biases):
    """Pure-JAX reference mirroring the PyTorch nested-loop forward."""
    logits = jnp.einsum('ktf,bft->btk', weights, h_ens) + jnp.transpose(biases)[None, :, :]
    return jax.nn.sigmoid(logits)


if __name__ == "__main__":
    key = jax.random.PRNGKey(0)
    k1, k2, k3 = jax.random.split(key, 3)

    # small shapes: batch=8, num_in_feat=32, t_dim=8, num_cls_tasks=4
    B, F, T, K = 8, 32, 8, 4
    h_ens = jax.random.normal(k1, (B, F, T), dtype=jnp.float32)
    weights = 0.1 * jax.random.normal(k2, (K, T, F), dtype=jnp.float32)
    biases = 0.1 * jax.random.normal(k3, (K, T), dtype=jnp.float32)

    out = temporal_attention_forward(h_ens, weights, biases)
    jax.block_until_ready(out)

    ref = reference(h_ens, weights, biases)
    assert out.shape == (B, T, K)
    err = float(jnp.max(jnp.abs(out - ref)))
    assert jnp.allclose(out, ref, atol=1e-4, rtol=1e-4), err
    print("KERNEL_OK")
</pallas_src>

<mosaic_0001>
module attributes {stable_mosaic.version = 11 : i64} {
  func.func @temporal_attention_kernel(%arg0: i32, %arg1: memref<8x256xf32, #tpu.memory_space<vmem>>, %arg2: memref<256x32xf32, #tpu.memory_space<vmem>>, %arg3: memref<1x32xf32, #tpu.memory_space<vmem>>, %arg4: memref<8x32xf32, #tpu.memory_space<vmem>>) attributes {dimension_semantics = [#tpu.dimension_semantics<parallel>], iteration_bounds = array<i64: 1>, scalar_prefetch = 0 : i64, scratch_operands = 0 : i64, tpu.core_type = #tpu.core_type<tc>, window_params = [{transform_indices = @transform_0, window_bounds = array<i64: 8, 256>}, {pipeline_mode = #tpu.pipeline_mode<synchronous>, transform_indices = @transform_1, window_bounds = array<i64: 256, 32>}, {pipeline_mode = #tpu.pipeline_mode<synchronous>, transform_indices = @transform_2, window_bounds = array<i64: 1, 32>}, {transform_indices = @transform_3, window_bounds = array<i64: 8, 32>}]} {
    %c0 = arith.constant 0 : index
    %c0_0 = arith.constant 0 : index
    %0 = vector.load %arg1[%c0, %c0_0] : memref<8x256xf32, #tpu.memory_space<vmem>>, vector<8x256xf32>
    %c0_1 = arith.constant 0 : index
    %c0_2 = arith.constant 0 : index
    %1 = vector.load %arg2[%c0_1, %c0_2] : memref<256x32xf32, #tpu.memory_space<vmem>>, vector<256x32xf32>
    %cst = arith.constant dense<0.000000e+00> : vector<8x32xf32>
    %2 = tpu.matmul %0, %1, %cst {dimension_numbers = #tpu.dot_dimension_numbers<[1], [0], [0], [1], [0, 0, 1, 1], [], []>, precision = #tpu.contract_precision<fp32>} : vector<8x256xf32>, vector<256x32xf32>, vector<8x32xf32> -> vector<8x32xf32>
    %c0_3 = arith.constant 0 : index
    %c0_4 = arith.constant 0 : index
    %3 = vector.load %arg3[%c0_3, %c0_4] : memref<1x32xf32, #tpu.memory_space<vmem>>, vector<1x32xf32>
    %4 = vector.broadcast %3 : vector<1x32xf32> to vector<8x32xf32>
    %5 = arith.addf %2, %4 : vector<8x32xf32>
    %cst_5 = arith.constant 5.000000e-01 : f32
    %6 = vector.broadcast %cst_5 : f32 to vector<8x32xf32>
    %7 = arith.mulf %6, %5 : vector<8x32xf32>
    %8 = math.tanh %7 : vector<8x32xf32>
    %cst_6 = arith.constant 1.000000e+00 : f32
    %9 = vector.broadcast %cst_6 : f32 to vector<8x32xf32>
    %10 = arith.addf %8, %9 : vector<8x32xf32>
    %cst_7 = arith.constant 5.000000e-01 : f32
    %11 = vector.broadcast %cst_7 : f32 to vector<8x32xf32>
    %12 = arith.mulf %11, %10 : vector<8x32xf32>
    %c0_8 = arith.constant 0 : index
    %c0_9 = arith.constant 0 : index
    %13 = vector.load %arg4[%c0_8, %c0_9] : memref<8x32xf32, #tpu.memory_space<vmem>>, vector<8x32xf32>
    tpu.vector_store %arg4[%c0_8, %c0_9], %12 {strides = array<i32>} : memref<8x32xf32, #tpu.memory_space<vmem>>, vector<8x32xf32>,
    return
  }
  func.func @transform_0(%arg0: i32) -> (i32, i32) {
    %c0_i32 = arith.constant 0 : i32
    %c0_i32_0 = arith.constant 0 : i32
    return %arg0, %c0_i32 : i32, i32
  }
  func.func @transform_1(%arg0: i32) -> (i32, i32) {
    %c0_i32 = arith.constant 0 : i32
    %c0_i32_0 = arith.constant 0 : i32
    %c0_i32_1 = arith.constant 0 : i32
    return %c0_i32, %c0_i32_0 : i32, i32
  }
  func.func @transform_2(%arg0: i32) -> (i32, i32) {
    %c0_i32 = arith.constant 0 : i32
    %c0_i32_0 = arith.constant 0 : i32
    %c0_i32_1 = arith.constant 0 : i32
    return %c0_i32, %c0_i32_0 : i32, i32
  }
  func.func @transform_3(%arg0: i32) -> (i32, i32) {
    %c0_i32 = arith.constant 0 : i32
    %c0_i32_0 = arith.constant 0 : i32
    return %arg0, %c0_i32 : i32, i32
  }
}

</mosaic_0001>

<bundles_post_ra>
// kernel: tpu_custom_call.1
= control target key start
LH: loop header
LB: loop body
LE: loop exit
PB: predicated region body
PF: predicated region fallthrough
CT: control target
= control target key end

     0   :  { %s1904_s0 = inlined_call_operand.vmem [shape: f32[8,256], index: 0, kind: input, shape index: {}]   ;;  %s1905_s1 = inlined_call_operand.vmem [shape: f32[256,32], index: 1, kind: input, shape index: {}]   ;;  %s1906_s2 = inlined_call_operand.vmem [shape: f32[1,32], index: 2, kind: input, shape index: {}]   ;;  %s1907_s3 = inlined_call_operand.hbm [shape: f32[8,32], index: 3, kind: output, shape index: {}]  }
   0x1   :  { %v33_v0 = vld [vmem:[%s1905_s1 + $0x80] sm:$0xff]  ;;  %v34_v1 = vld [vmem:[%s1905_s1 + $0x88] sm:$0xff]  ;;  %v35_v7 = vld [vmem:[%s1905_s1 + $0x90] sm:$0xff] }
   0x2   :  { %v17_v2 = vld [vmem:[%s1905_s1] sm:$0xff]  ;;  %v105_v3 = vand.u32 4294901760, %v33_v0  ;;  %v108_v4 = vand.u32 4294901760, %v34_v1  ;;  %v18_v5 = vld [vmem:[%s1905_s1 + $0x8] sm:$0xff]  ;;  %v36_v8 = vld [vmem:[%s1905_s1 + $0x98] sm:$0xff]  ;;  %v111_v10 = vand.u32 4294901760, %v35_v7 }
   0x3   :  { %v57_v6 = vand.u32 4294901760, %v17_v2  ;;  %v60_v9 = vand.u32 4294901760, %v18_v5  ;;  %v114_v11 = vand.u32 4294901760, %v36_v8  ;;  %v19_v12 = vld [vmem:[%s1905_s1 + $0x10] sm:$0xff]  ;;  %v20_v13 = vld [vmem:[%s1905_s1 + $0x18] sm:$0xff]  ;;  %v37_v18 = vld [vmem:[%s1905_s1 + $0xa0] sm:$0xff] }
   0x4   :  { %v1413_v14 = vpack.c.bf16 %v108_v4, %v105_v3  ;;  %v63_v16 = vand.u32 4294901760, %v19_v12  ;;  %v66_v17 = vand.u32 4294901760, %v20_v13  ;;  %v38_v19 = vld [vmem:[%s1905_s1 + $0xa8] sm:$0xff]  ;;  %v21_v23 = vld [vmem:[%s1905_s1 + $0x20] sm:$0xff]  ;;  %v1436_v25 = vsub.f32 %v35_v7, %v111_v10  ;;  %v39_v37 = vld [vmem:[%s1905_s1 + $0xb0] sm:$0xff] }
   0x5   :  { %v1415_v15 = vsub.f32 %v17_v2, %v57_v6  ;;  %v1423_v20 = vpack.c.bf16 %v60_v9, %v57_v6  ;;  %v1425_v21 = vsub.f32 %v18_v5, %v60_v9  ;;  %v1427_v22 = vpack.c.bf16 %v114_v11, %v111_v10  ;;  %v22_v24 = vld [vmem:[%s1905_s1 + $0x28] sm:$0xff]  ;;  %v40_v42 = vld [vmem:[%s1905_s1 + $0xb8] sm:$0xff]  ;;  %v23_v55 = vld [vmem:[%s1905_s1 + $0x30] sm:$0xff] }
   0x6   :  { %1150 = vmatprep.subr.bf16.mxu0 %v1413_v14  ;;  %v1438_v26 = vsub.f32 %v36_v8, %v114_v11  ;;  %v1440_v27 = vpack.c.bf16 %v66_v17, %v63_v16  ;;  %v1442_v28 = vsub.f32 %v19_v12, %v63_v16  ;;  %v117_v29 = vand.u32 4294901760, %v37_v18  ;;  %v24_v56 = vld [vmem:[%s1905_s1 + $0x38] sm:$0xff] }
   0x7   :  { %1152 = vmatpush3.bf16.msra.mxu0 %v1423_v20  ;;  %v120_v30 = vand.u32 4294901760, %v38_v19  ;;  %v1445_v31 = vsub.f32 %v33_v0, %v105_v3  ;;  %v1447_v32 = vsub.f32 %v34_v1, %v108_v4  ;;  %v69_v33 = vand.u32 4294901760, %v21_v23 }
   0x8   :  { %1154 = vmatprep.subr.bf16.mxu0 %v1427_v22  ;;  %v72_v34 = vand.u32 4294901760, %v22_v24  ;;  %v1924_v35 = vand.u32 4294901760, %v1415_v15  ;;  %v1923_v36 = vand.u32 4294901760, %v1425_v21  ;;  %v1455_v38 = vsub.f32 %v20_v13, %v66_v17 }
   0x9   :  { %v1457_v39 = vpack.c.bf16 %v120_v30, %v117_v29  ;;  %v1459_v40 = vsub.f32 %v37_v18, %v117_v29  ;;  %v1929_v41 = vand.u32 4294901760, %v1445_v31  ;;  %v1465_v43 = vsub.f32 %v38_v19, %v120_v30 }
   0xa   :  { %v1926_v44 = vand.u32 4294901760, %v1447_v32  ;;  %v1468_v45 = vpack.c.bf16 %v72_v34, %v69_v33  ;;  %v1470_v46 = vsub.f32 %v21_v23, %v69_v33  ;;  %v172_v48 = vsub.f32 %v1415_v15, %v1924_v35 }
   0xb   :  { %1156 = vmatpush3.bf16.msra.mxu0 %v1440_v27  ;;  %v284_v47 = vsub.f32 %v1445_v31, %v1929_v41  ;;  %v179_v49 = vsub.f32 %v1425_v21, %v1923_v36  ;;  %v123_v50 = vand.u32 4294901760, %v39_v37  ;;  %v126_v52 = vand.u32 4294901760, %v40_v42 }
   0xc   :  { %1158 = vmatprep.subr.bf16.mxu0 %v1457_v39  ;;  %v291_v51 = vsub.f32 %v1447_v32, %v1926_v44  ;;  %v1921_v53 = vand.u32 4294901760, %v1436_v25  ;;  %v1920_v54 = vand.u32 4294901760, %v1438_v26  ;;  %v1494_v58 = vsub.f32 %v22_v24, %v72_v34 }
   0xd   :  { %v285_v57 = vand.u32 4294901760, %v284_v47  ;;  %v173_v59 = vand.u32 4294901760, %v172_v48  ;;  %v180_v60 = vand.u32 4294901760, %v179_v49 }
   0xe   :  { %8 = vsyncpa [#allocation3], 0  ;;  %v292_v61 = vand.u32 4294901760, %v291_v51  ;;  %v1496_v62 = vpack.c.bf16 %v126_v52, %v123_v50  ;;  %v1498_v63 = vsub.f32 %v39_v37, %v123_v50  ;;  %v298_v0 = vsub.f32 %v1436_v25, %v1921_v53  ;;  %v41_v5 = vld [vmem:[%s1905_s1 + $0xc0] sm:$0xff]  ;;  %v42_v6 = vld [vmem:[%s1905_s1 + $0xc8] sm:$0xff] }
   0xf   :  { %1160 = vmatpush3.bf16.msra.mxu0 %v1468_v45  ;;  %v1183_v1 = vpack.c.bf16 %v180_v60, %v173_v59  ;;  %v305_v2 = vsub.f32 %v1438_v26, %v1920_v54  ;;  %v75_v3 = vand.u32 4294901760, %v23_v55  ;;  %v78_v4 = vand.u32 4294901760, %v24_v56  ;;  %v25_v11 = vld [vmem:[%s1905_s1 + $0x40] sm:$0xff]  ;;  %v26_v29 = vld [vmem:[%s1905_s1 + $0x48] sm:$0xff] }
  0x10   :  { %v1181_v7 = vpack.c.bf16 %v292_v61, %v285_v57  ;;  %1162 = vmatprep.subr.bf16.mxu0 %v1496_v62  ;;  %v299_v8 = vand.u32 4294901760, %v298_v0  ;;  %v1919_v9 = vand.u32 4294901760, %v1442_v28  ;;  %v1916_v10 = vand.u32 4294901760, %v1455_v38  ;;  %v44_v57 = vld [vmem:[%s1905_s1 + $0xd8] sm:$0xff] }
  0x11   :  { %v1519_v12 = vsub.f32 %v40_v42, %v126_v52  ;;  %v306_v13 = vand.u32 4294901760, %v305_v2  ;;  %v1521_v16 = vpack.c.bf16 %v78_v4, %v75_v3  ;;  %v1523_v17 = vsub.f32 %v23_v55, %v75_v3 }
  0x12   :  { %1182 = vmatprep.subr.bf16.mxu1 %v1181_v7  ;;  %v186_v18 = vsub.f32 %v1442_v28, %v1919_v9  ;;  %v193_v19 = vsub.f32 %v1455_v38, %v1916_v10  ;;  %v129_v23 = vand.u32 4294901760, %v41_v5  ;;  %v132_v24 = vand.u32 4294901760, %v42_v6 }
  0x13   :  { %1184 = vmatpush3.bf16.msra.mxu1 %v1183_v1  ;;  %v1185_v30 = vpack.c.bf16 %v306_v13, %v299_v8  ;;  %1164 = vmatpush3.bf16.msra.mxu0 %v1521_v16  ;;  %v1914_v33 = vand.u32 4294901760, %v1459_v40  ;;  %v1913_v34 = vand.u32 4294901760, %v1465_v43  ;;  %v81_v37 = vand.u32 4294901760, %v25_v11  ;;  %v27_v1 = vld [vmem:[%s1905_s1 + $0x50] sm:$0xff] }
  0x14   :  { %v1537_v42 = vsub.f32 %v24_v56, %v78_v4  ;;  %v187_v47 = vand.u32 4294901760, %v186_v18  ;;  %v194_v48 = vand.u32 4294901760, %v193_v19  ;;  %v1539_v49 = vpack.c.bf16 %v132_v24, %v129_v23  ;;  %v43_v56 = vld [vmem:[%s1905_s1 + $0xd0] sm:$0xff]  ;;  %v28_v18 = vld [vmem:[%s1905_s1 + $0x58] sm:$0xff] }
  0x15   :  { %1186 = vmatprep.subr.bf16.mxu1 %v1185_v30  ;;  %v1541_v50 = vsub.f32 %v41_v5, %v129_v23  ;;  %v312_v51 = vsub.f32 %v1459_v40, %v1914_v33  ;;  %v319_v52 = vsub.f32 %v1465_v43, %v1913_v34  ;;  %v84_v55 = vand.u32 4294901760, %v26_v29 }
  0x16   :  { %v1187_v59 = vpack.c.bf16 %v194_v48, %v187_v47  ;;  %1166 = vmatprep.subr.bf16.mxu0 %v1539_v49  ;;  %v1556_v60 = vsub.f32 %v42_v6, %v132_v24  ;;  %v1911_v61 = vand.u32 4294901760, %v1470_v46  ;;  %v1910_v0 = vand.u32 4294901760, %v1494_v58 }
  0x17   :  { %v313_v2 = vand.u32 4294901760, %v312_v51  ;;  %v320_v3 = vand.u32 4294901760, %v319_v52  ;;  %v1563_v4 = vpack.c.bf16 %v84_v55, %v81_v37  ;;  %v1565_v5 = vsub.f32 %v25_v11, %v81_v37 }
  0x18   :  { %1188 = vmatpush3.bf16.msra.mxu1 %v1187_v59  ;;  %v200_v6 = vsub.f32 %v1470_v46, %v1911_v61  ;;  %v207_v7 = vsub.f32 %v1494_v58, %v1910_v0  ;;  %v135_v8 = vand.u32 4294901760, %v43_v56  ;;  %v138_v13 = vand.u32 4294901760, %v44_v57 }
  0x19   :  { %v1189_v19 = vpack.c.bf16 %v320_v3, %v313_v2  ;;  %1168 = vmatpush3.bf16.msra.mxu0 %v1563_v4  ;;  %v1909_v11 = vand.u32 4294901760, %v1498_v63  ;;  %v1908_v23 = vand.u32 4294901760, %v1519_v12  ;;  %v87_v24 = vand.u32 4294901760, %v27_v1 }
  0x1a   :  { %v1579_v30 = vsub.f32 %v26_v29, %v84_v55  ;;  %v201_v37 = vand.u32 4294901760, %v200_v6  ;;  %v208_v47 = vand.u32 4294901760, %v207_v7  ;;  %v1581_v48 = vpack.c.bf16 %v138_v13, %v135_v8  ;;  %v45_v29 = vld [vmem:[%s1905_s1 + $0xe0] sm:$0xff]  ;;  %v46_v55 = vld [vmem:[%s1905_s1 + $0xe8] sm:$0xff] }
  0x1b   :  { %1190 = vmatprep.subr.bf16.mxu1 %v1189_v19  ;;  %v1583_v51 = vsub.f32 %v43_v56, %v135_v8  ;;  %v326_v52 = vsub.f32 %v1498_v63, %v1909_v11  ;;  %v333_v59 = vsub.f32 %v1519_v12, %v1908_v23  ;;  %v90_v2 = vand.u32 4294901760, %v28_v18  ;;  %v29_v8 = vld [vmem:[%s1905_s1 + $0x60] sm:$0xff] }
  0x1c   :  { %v1191_v3 = vpack.c.bf16 %v208_v47, %v201_v37  ;;  %1170 = vmatprep.subr.bf16.mxu0 %v1581_v48  ;;  %v1598_v56 = vsub.f32 %v44_v57, %v138_v13  ;;  %v1912_v6 = vand.u32 4294901760, %v1523_v17  ;;  %v1915_v7 = vand.u32 4294901760, %v1537_v42 }
  0x1d   :  { %v327_v19 = vand.u32 4294901760, %v326_v52  ;;  %v334_v23 = vand.u32 4294901760, %v333_v59  ;;  %v1605_v11 = vpack.c.bf16 %v90_v2, %v87_v24  ;;  %v1607_v0 = vsub.f32 %v27_v1, %v87_v24  ;;  %v30_v52 = vld [vmem:[%s1905_s1 + $0x68] sm:$0xff] }
  0x1e   :  { %1192 = vmatpush3.bf16.msra.mxu1 %v1191_v3  ;;  %v214_v57 = vsub.f32 %v1523_v17, %v1912_v6  ;;  %v221_v13 = vsub.f32 %v1537_v42, %v1915_v7  ;;  %v141_v37 = vand.u32 4294901760, %v45_v29  ;;  %v144_v47 = vand.u32 4294901760, %v46_v55 }
  0x1f   :  { %1953 = vst [vmem:[#allocation5_spill] sm:$0xff] %v1605_v11  ;;  %v1193_v59 = vpack.c.bf16 %v334_v23, %v327_v19  ;;  %1172 = vmatpush3.bf16.msra.mxu0 %v1605_v11  ;;  %v1918_v1 = vand.u32 4294901760, %v1541_v50  ;;  %v1917_v24 = vand.u32 4294901760, %v1556_v60  ;;  %v93_v3 = vand.u32 4294901760, %v29_v8 }
  0x20   :  { %v1621_v61 = vsub.f32 %v28_v18, %v90_v2  ;;  %v215_v6 = vand.u32 4294901760, %v214_v57  ;;  %v222_v34 = vand.u32 4294901760, %v221_v13  ;;  %v1623_v33 = vpack.c.bf16 %v144_v47, %v141_v37  ;;  %v47_v18 = vld [vmem:[%s1905_s1 + $0xf0] sm:$0xff]  ;;  %v48_v2 = vld [vmem:[%s1905_s1 + $0xf8] sm:$0xff] }
  0x21   :  { %1194 = vmatprep.subr.bf16.mxu1 %v1193_v59  ;;  %v1625_v7 = vsub.f32 %v45_v29, %v141_v37  ;;  %v340_v23 = vsub.f32 %v1541_v50, %v1918_v1  ;;  %v347_v19 = vsub.f32 %v1556_v60, %v1917_v24  ;;  %v96_v10 = vand.u32 4294901760, %v30_v52  ;;  %v31_v59 = vld [vmem:[%s1905_s1 + $0x70] sm:$0xff] }
  0x22   :  { %1954 = vst [vmem:[#allocation6_spill] sm:$0xff] %v1623_v33  ;;  %v1195_v57 = vpack.c.bf16 %v222_v34, %v215_v6  ;;  %1174 = vmatprep.subr.bf16.mxu0 %v1623_v33  ;;  %v1640_v29 = vsub.f32 %v46_v55, %v144_v47  ;;  %v1922_v13 = vand.u32 4294901760, %v1565_v5  ;;  %v1925_v37 = vand.u32 4294901760, %v1579_v30 }
  0x23   :  { %v341_v24 = vand.u32 4294901760, %v340_v23  ;;  %v348_v1 = vand.u32 4294901760, %v347_v19  ;;  %v1647_v9 = vpack.c.bf16 %v96_v10, %v93_v3  ;;  %v1649_v54 = vsub.f32 %v29_v8, %v93_v3  ;;  %v32_v23 = vld [vmem:[%s1905_s1 + $0x78] sm:$0xff] }
  0x24   :  { %1196 = vmatpush3.bf16.msra.mxu1 %v1195_v57  ;;  %v228_v34 = vsub.f32 %v1565_v5, %v1922_v13  ;;  %v235_v55 = vsub.f32 %v1579_v30, %v1925_v37  ;;  %v147_v6 = vand.u32 4294901760, %v47_v18  ;;  %v150_v47 = vand.u32 4294901760, %v48_v2 }
  0x25   :  { %1955 = vst [vmem:[#allocation7_spill] sm:$0xff] %v1647_v9  ;;  %v1197_v19 = vpack.c.bf16 %v348_v1, %v341_v24  ;;  %1176 = vmatpush3.bf16.msra.mxu0 %v1647_v9  ;;  %v1928_v8 = vand.u32 4294901760, %v1583_v51  ;;  %v1927_v3 = vand.u32 4294901760, %v1598_v56  ;;  %v99_v57 = vand.u32 4294901760, %v31_v59 }
  0x26   :  { %v1663_v53 = vsub.f32 %v30_v52, %v96_v10  ;;  %v229_v13 = vand.u32 4294901760, %v228_v34  ;;  %v236_v36 = vand.u32 4294901760, %v235_v55  ;;  %v1665_v35 = vpack.c.bf16 %v150_v47, %v147_v6  ;;  %v16_v10 = vld [vmem:[%s1904_s0 + $0x8] sm:$0xff] }
  0x27   :  { %1198 = vmatprep.subr.bf16.mxu1 %v1197_v19  ;;  %v1667_v37 = vsub.f32 %v47_v18, %v147_v6  ;;  %v354_v1 = vsub.f32 %v1583_v51, %v1928_v8  ;;  %v361_v24 = vsub.f32 %v1598_v56, %v1927_v3  ;;  %v102_v44 = vand.u32 4294901760, %v32_v23  ;;  %v15_v6 = vld [vmem:[%s1904_s0] sm:$0xff] }
  0x28   :  { %1956 = vst [vmem:[#allocation8_spill] sm:$0xff] %v1665_v35  ;;  %v1199_v52 = vpack.c.bf16 %v236_v36, %v229_v13  ;;  %1178 = vmatprep.subr.bf16.mxu0 %v1665_v35  ;;  %v1679_v34 = vsub.f32 %v48_v2, %v150_v47  ;;  %v1932_v18 = vand.u32 4294901760, %v1607_v0  ;;  %v1933_v55 = vand.u32 4294901760, %v1621_v61 }
  0x29   :  { %v355_v19 = vand.u32 4294901760, %v354_v1  ;;  %v362_v3 = vand.u32 4294901760, %v361_v24  ;;  %v1686_v8 = vpack.c.bf16 %v102_v44, %v99_v57  ;;  %v1688_v41 = vsub.f32 %v31_v59, %v99_v57 }
  0x2a   :  { %1200 = vmatpush3.bf16.msra.mxu1 %v1199_v52  ;;  %v242_v36 = vsub.f32 %v1607_v0, %v1932_v18  ;;  %v249_v2 = vsub.f32 %v1621_v61, %v1933_v55  ;;  %v1696_v13 = vand.u32 4294901760, %v16_v10  ;;  %v1936_v47 = vand.u32 4294901760, %v1625_v7 }
  0x2b   :  { %1957 = vst [vmem:[#allocation9_spill] sm:$0xff] %v1686_v8  ;;  %v1201_v35 = vpack.c.bf16 %v362_v3, %v355_v19  ;;  %1180 = vmatpush3.bf16.msra.mxu0 %v1686_v8  ;;  %v1942_v1 = vand.u32 4294901760, %v1640_v29  ;;  %v1213_v59 = vpack.c.bf16 %v1447_v32, %v1445_v31  ;;  %v1703_v57 = vand.u32 4294901760, %v15_v6 }
  0x2c   :  { %1958 = vst [vmem:[#allocation10_spill] sm:$0xff] %v1696_v13  ;;  %v243_v24 = vand.u32 4294901760, %v242_v36  ;;  %v250_v52 = vand.u32 4294901760, %v249_v2  ;;  %v1706_v18 = vsub.f32 %v16_v10, %v1696_v13  ;;  %v368_v55 = vsub.f32 %v1625_v7, %v1936_v47  ;;  %393 = vmatprep.mubr.f32.mxu1 %v1696_v13 }
  0x2d   :  { %1202 = vmatprep.subr.bf16.mxu1 %v1201_v35  ;;  %v375_v3 = vsub.f32 %v1640_v29, %v1942_v1  ;;  %1214 = vmatprep.subr.bf16.mxu0 %v1213_v59  ;;  %v1716_v19 = vsub.f32 %v15_v6, %v1703_v57  ;;  %v1941_v36 = vand.u32 4294901760, %v1649_v54  ;;  %v1943_v10 = vand.u32 4294901760, %v1663_v53 }
  0x2e   :  { %v1720_v2 = vsub.f32 %v32_v23, %v102_v44  ;;  %v1203_v8 = vpack.c.bf16 %v250_v52, %v243_v24  ;;  %v1944_v47 = vand.u32 4294901760, %v1706_v18  ;;  %v369_v9 = vand.u32 4294901760, %v368_v55 }
  0x2f   :  { %v376_v13 = vand.u32 4294901760, %v375_v3  ;;  %v160_v35 = vand.u32 4294901760, %v1716_v19  ;;  %v256_v59 = vsub.f32 %v1649_v54, %v1941_v36  ;;  %v263_v6 = vsub.f32 %v1663_v53, %v1943_v10 }
  0x30   :  { %1204 = vmatpush3.bf16.msra.mxu1 %v1203_v8  ;;  %v155_v44 = vsub.f32 %v1706_v18, %v1944_v47  ;;  %v1215_v23 = vpack.c.bf16 %v1425_v21, %v1415_v15  ;;  %v1949_v55 = vand.u32 4294901760, %v1667_v37  ;;  %v1952_v24 = vand.u32 4294901760, %v1679_v34 }
  0x31   :  { %v1205_v52 = vpack.c.bf16 %v376_v13, %v369_v9  ;;  %v161_v3 = vsub.f32 %v1716_v19, %v160_v35  ;;  %v257_v36 = vand.u32 4294901760, %v256_v59  ;;  %v264_v1 = vand.u32 4294901760, %v263_v6 }
  0x32   :  { %v156_v10 = vand.u32 4294901760, %v155_v44  ;;  %v382_v8 = vsub.f32 %v1667_v37, %v1949_v55  ;;  %v389_v47 = vsub.f32 %v1679_v34, %v1952_v24  ;;  %v1951_v33 = vand.u32 4294901760, %v1688_v41 }
  0x33   :  { %1206 = vmatprep.subr.bf16.mxu1 %v1205_v52  ;;  %v162_v11 = vand.u32 4294901760, %v161_v3  ;;  %v1207_v9 = vpack.c.bf16 %v264_v1, %v257_v36  ;;  %v1217_v13 = vpack.c.bf16 %v1438_v26, %v1436_v25  ;;  %v1950_v59 = vand.u32 4294901760, %v1720_v2 }
  0x34   :  { %157 = vmatprep.mubr.f32.mxu0 %v156_v10  ;;  %v383_v6 = vand.u32 4294901760, %v382_v8  ;;  %v390_v44 = vand.u32 4294901760, %v389_v47  ;;  %v270_v55 = vsub.f32 %v1688_v41, %v1951_v33  ;;  %v1219_v3 = vpack.c.bf16 %v1455_v38, %v1442_v28 }
  0x35   :  { %163 = vmatmul.mubr.f32.vlgmr.msra.gmra.mrb[0].mxu0 %v162_v11  ;;  %1208 = vmatpush3.bf16.msra.mxu1 %v1207_v9  ;;  %v277_v52 = vsub.f32 %v1720_v2, %v1950_v59  ;;  %v1221_v10 = vpack.c.bf16 %v1465_v43, %v1459_v40  ;;  %v1223_v11 = vpack.c.bf16 %v1494_v58, %v1470_v46  ;;  %v1960_v9 = vand.u32 4294901760, %v1447_v32 }
  0x36   :  { %1216 = vmatpush3.bf16.msra.mxu0 %v1215_v23  ;;  %v1209_v1 = vpack.c.bf16 %v390_v44, %v383_v6  ;;  %v271_v36 = vand.u32 4294901760, %v270_v55  ;;  %530 = vmatprep.mubr.f32.mxu0 %v1706_v18  ;;  %v1225_v8 = vpack.c.bf16 %v1519_v12, %v1498_v63  ;;  %v1959_v55 = vand.u32 4294901760, %v1445_v31 }
  0x37   :  { %1218 = vmatprep.subr.bf16.mxu0 %v1217_v13  ;;  %v278_v47 = vand.u32 4294901760, %v277_v52  ;;  %v1961_v44 = vand.u32 4294901760, %v1415_v15  ;;  %v1962_v13 = vand.u32 4294901760, %v1425_v21  ;;  %v1963_v59 = vand.u32 4294901760, %v1436_v25 }
  0x38   :  { %1210 = vmatprep.subr.bf16.mxu1 %v1209_v1  ;;  %v1277_v6 = vpack.c.bf16 %v1960_v9, %v1959_v55  ;;  %v1964_v1 = vand.u32 4294901760, %v1438_v26  ;;  %v1965_v24 = vand.u32 4294901760, %v1442_v28  ;;  %v1967_v31 = vand.u32 4294901760, %v1459_v40 }
  0x39   :  { %v1211_v23 = vpack.c.bf16 %v278_v47, %v271_v36  ;;  %v1279_v52 = vpack.c.bf16 %v1962_v13, %v1961_v44  ;;  %v1966_v36 = vand.u32 4294901760, %v1455_v38  ;;  %v1968_v32 = vand.u32 4294901760, %v1465_v43  ;;  %v1983_v13 = vld [vmem:[#allocation7_spill] sm:$0xff] }
  0x3a   :  { %v1281_v33 = vpack.c.bf16 %v1964_v1, %v1963_v59  ;;  %1220 = vmatpush3.bf16.msra.mxu0 %v1219_v3  ;;  %v1969_v15 = vand.u32 4294901760, %v1470_v46  ;;  %v1970_v21 = vand.u32 4294901760, %v1494_v58  ;;  %v1971_v25 = vand.u32 4294901760, %v1498_v63  ;;  %v1984_v1 = vld [vmem:[#allocation8_spill] sm:$0xff] }
  0x3b   :  { %v1283_v47 = vpack.c.bf16 %v1966_v36, %v1965_v24  ;;  %v1285_v55 = vpack.c.bf16 %v1968_v32, %v1967_v31  ;;  %v1972_v26 = vand.u32 4294901760, %v1519_v12  ;;  %1212 = vmatpush3.bf16.msra.mxu1 %v1211_v23  ;;  %1222 = vmatprep.subr.bf16.mxu0 %v1221_v10  ;;  %v1973_v28 = vand.u32 4294901760, %v1523_v17  ;;  %v1985_v36 = vld [vmem:[#allocation9_spill] sm:$0xff] }
  0x3c   :  { %v1287_v9 = vpack.c.bf16 %v1970_v21, %v1969_v15  ;;  %v1974_v38 = vand.u32 4294901760, %v1537_v42  ;;  %v1975_v43 = vand.u32 4294901760, %v1541_v50  ;;  %v1976_v24 = vand.u32 4294901760, %v1556_v60  ;;  %1246 = vmatprep.subr.bf16.mxu1 %v1413_v14 }
  0x3d   :  { %v1289_v59 = vpack.c.bf16 %v1972_v26, %v1971_v25  ;;  %v1977_v58 = vand.u32 4294901760, %v1565_v5  ;;  %v1978_v3 = vand.u32 4294901760, %v1579_v30  ;;  %v1227_v12 = vpack.c.bf16 %v1537_v42, %v1523_v17 }
  0x3e   :  { %v1291_v40 = vpack.c.bf16 %v1974_v38, %v1973_v28  ;;  %v1293_v46 = vpack.c.bf16 %v1976_v24, %v1975_v43  ;;  %395 = vmatmul.mubr.f32.vlgmr.msra.gmra.mrb[0].mxu1 %v1703_v57  ;;  %1224 = vmatpush3.bf16.msra.mxu0 %v1223_v11  ;;  %v1229_v10 = vpack.c.bf16 %v1556_v60, %v1541_v50  ;;  %v1979_v23 = vand.u32 4294901760, %v1706_v18  ;;  %v1980_v18 = vld [vmem:[#allocation5_spill] sm:$0xff]  ;;  %v1981_v11 = vld [vmem:[#allocation6_spill] sm:$0xff] }
  0x3f   :  { %v1295_v63 = vpack.c.bf16 %v1978_v3, %v1977_v58  ;;  %1248 = vmatpush3.bf16.msra.mxu1 %v1423_v20  ;;  %1226 = vmatprep.subr.bf16.mxu0 %v1225_v8  ;;  %v1231_v44 = vpack.c.bf16 %v1579_v30, %v1565_v5  ;;  %v1233_v17 = vpack.c.bf16 %v1598_v56, %v1583_v51  ;;  %v1982_v8 = vld [vmem:[#allocation10_spill] sm:$0xff]  ;;  %vm922_vm0 = vcmask 261120  }
  0x40   :  { %1250 = vmatprep.subr.bf16.mxu1 %v1427_v22  ;;  %637 = vmatprep.mubr.f32.mxu1 %v1979_v23  ;;  %v1235_v42 = vpack.c.bf16 %v1621_v61, %v1607_v0  ;;  %v1237_v50 = vpack.c.bf16 %v1640_v29, %v1625_v7  ;;  %v1239_v60 = vpack.c.bf16 %v1663_v53, %v1649_v54 }
  0x41   :  { %v1241_v5 = vpack.c.bf16 %v1679_v34, %v1667_v37  ;;  %v1243_v30 = vpack.c.bf16 %v1720_v2, %v1688_v41 }
  0x42   :  { %1228 = vmatpush3.bf16.msra.mxu0 %v1227_v12 }
  0x43   :  { %1252 = vmatpush3.bf16.msra.mxu1 %v1440_v27  ;;  %1230 = vmatprep.subr.bf16.mxu0 %v1229_v10 }
  0x44   :  { %1254 = vmatprep.subr.bf16.mxu1 %v1457_v39 }
  0x46   :  { %1232 = vmatpush3.bf16.msra.mxu0 %v1231_v44 }
  0x47   :  { %1256 = vmatpush3.bf16.msra.mxu1 %v1468_v45  ;;  %1234 = vmatprep.subr.bf16.mxu0 %v1233_v17 }
  0x48   :  { %1258 = vmatprep.subr.bf16.mxu1 %v1496_v62 }
  0x4a   :  { %1236 = vmatpush3.bf16.msra.mxu0 %v1235_v42 }
  0x4b   :  { %1260 = vmatpush3.bf16.msra.mxu1 %v1521_v16  ;;  %1238 = vmatprep.subr.bf16.mxu0 %v1237_v50 }
  0x4c   :  { %1262 = vmatprep.subr.bf16.mxu1 %v1539_v49 }
  0x4e   :  { %1240 = vmatpush3.bf16.msra.mxu0 %v1239_v60 }
  0x4f   :  { %1264 = vmatpush3.bf16.msra.mxu1 %v1563_v4  ;;  %1242 = vmatprep.subr.bf16.mxu0 %v1241_v5 }
  0x50   :  { %1266 = vmatprep.subr.bf16.mxu1 %v1581_v48 }
  0x52   :  { %1244 = vmatpush3.bf16.msra.mxu0 %v1243_v30 }
  0x53   :  { %1268 = vmatpush3.bf16.msra.mxu1 %v1980_v18  ;;  %1278 = vmatprep.subr.bf16.mxu0 %v1277_v6  ;;  %v1987_v6 = vand.u32 4294901760, %v1598_v56 }
  0x54   :  { %1270 = vmatprep.subr.bf16.mxu1 %v1981_v11 }
  0x55   :  { %533 = vmatmul.mubr.f32.vlgmr.msra.gmra.mrb[2].mxu0 %v1716_v19  ;;  %v1988_v19 = vand.u32 4294901760, %v1607_v0 }
  0x56   :  { %1280 = vmatpush3.bf16.msra.mxu0 %v1279_v52  ;;  %807 = vmatprep.mubr.f32.mxu0 %v1982_v8 }
  0x57   :  { %1272 = vmatpush3.bf16.msra.mxu1 %v1983_v13  ;;  %1282 = vmatprep.subr.bf16.mxu0 %v1281_v33  ;;  %v1986_v33 = vand.u32 4294901760, %v1583_v51  ;;  %v1992_v51 = vand.u32 4294901760, %v1649_v54 }
  0x58   :  { %1274 = vmatprep.subr.bf16.mxu1 %v1984_v1 }
  0x5a   :  { %1284 = vmatpush3.bf16.msra.mxu0 %v1283_v47 }
  0x5b   :  { %1276 = vmatpush3.bf16.msra.mxu1 %v1985_v36  ;;  %1286 = vmatprep.subr.bf16.mxu0 %v1285_v55 }
  0x5c   :  { %1310 = vmatprep.subr.bf16.mxu1 %v1413_v14  ;;  %v1297_v14 = vpack.c.bf16 %v1987_v6, %v1986_v33 }
  0x5e   :  { %641 = vmatmul.mubr.f32.vlgmr.msra.gmra.mrb[2].mxu1 %v160_v35  ;;  %1288 = vmatpush3.bf16.msra.mxu0 %v1287_v9 }
  0x5f   :  { %1312 = vmatpush3.bf16.msra.mxu1 %v1423_v20  ;;  %1290 = vmatprep.subr.bf16.mxu0 %v1289_v59  ;;  %v1989_v20 = vand.u32 4294901760, %v1621_v61  ;;  %v1994_v61 = vand.u32 4294901760, %v1667_v37 }
  0x60   :  { %1314 = vmatprep.subr.bf16.mxu1 %v1427_v22  ;;  %911 = vmatprep.mubr.f32.mxu1 %v1982_v8  ;;  %v1990_v22 = vand.u32 4294901760, %v1625_v7  ;;  %v1996_v7 = vand.u32 4294901760, %v1688_v41 }
  0x61   :  { %v1299_v35 = vpack.c.bf16 %v1989_v20, %v1988_v19 }
  0x62   :  { %1292 = vmatpush3.bf16.msra.mxu0 %v1291_v40 }
  0x63   :  { %1316 = vmatpush3.bf16.msra.mxu1 %v1440_v27  ;;  %1294 = vmatprep.subr.bf16.mxu0 %v1293_v46  ;;  %v1991_v27 = vand.u32 4294901760, %v1640_v29 }
  0x64   :  { %1318 = vmatprep.subr.bf16.mxu1 %v1457_v39  ;;  %v1993_v39 = vand.u32 4294901760, %v1663_v53 }
  0x65   :  { %v1301_v52 = vpack.c.bf16 %v1991_v27, %v1990_v22 }
  0x66   :  { %1296 = vmatpush3.bf16.msra.mxu0 %v1295_v63  ;;  %v1303_v56 = vpack.c.bf16 %v1993_v39, %v1992_v51 }
  0x67   :  { %1320 = vmatpush3.bf16.msra.mxu1 %v1468_v45  ;;  %1298 = vmatprep.subr.bf16.mxu0 %v1297_v14  ;;  %v1995_v45 = vand.u32 4294901760, %v1679_v34 }
  0x68   :  { %1322 = vmatprep.subr.bf16.mxu1 %v1496_v62  ;;  %v1997_v62 = vand.u32 4294901760, %v1720_v2 }
  0x69   :  { %v1305_v0 = vpack.c.bf16 %v1995_v45, %v1994_v61 }
  0x6a   :  { %1300 = vmatpush3.bf16.msra.mxu0 %v1299_v35  ;;  %v1307_v29 = vpack.c.bf16 %v1997_v62, %v1996_v7 }
  0x6b   :  { %1324 = vmatpush3.bf16.msra.mxu1 %v1521_v16  ;;  %1302 = vmatprep.subr.bf16.mxu0 %v1301_v52  ;;  %v938_v16 = vld [vmem:[%s1906_s2] ss:$0 sm:$0xff]  ;;  %s1368_s2 = smov [#allocation2]  }
  0x6c   :  { %1326 = vmatprep.subr.bf16.mxu1 %v1539_v49  ;;  %s930_s26 = sshll.u32 %s1368_s2, 4  ;;  %s931_s26 = int_to_ptr.vmem [resolvable:$true] %s930_s26 }
  0x6d   :  { %s1344_s27 = scalar_lea.vmem %s931_s26, 128  ;;  %p1349_p1 = scmp.lt.s32.totalorder %s931_s26, %s931_s26 }
  0x6e   :  { %1304 = vmatpush3.bf16.msra.mxu0 %v1303_v56  ;;  %p1345_p0 = scmp.ne.s32.totalorder %s931_s26, %s1344_s27  ;;  %p1350_p2 = scmp.lt.s32.totalorder %s1344_s27, %s1344_s27 }
  0x6f   :  { %1328 = vmatpush3.bf16.msra.mxu1 %v1563_v4  ;;  %1306 = vmatprep.subr.bf16.mxu0 %v1305_v0 }
  0x70   :  { %1330 = vmatprep.subr.bf16.mxu1 %v1581_v48  ;;  %p1351_p3 = por %p1350_p2, %p1349_p1 }
  0x72   :  { %1308 = vmatpush3.bf16.msra.mxu0 %v1307_v29  ;;  %p1352_p4 = pnand %p1351_p3, %p1345_p0 }
  0x73   :  { %1332 = vmatpush3.bf16.msra.mxu1 %v1980_v18 }
  0x74   :  { %1334 = vmatprep.subr.bf16.mxu1 %v1981_v11 }
  0x75   :  { %809 = vmatmul.mubr.f32.vlgmr.msra.gmra.mrb[4].mxu0 %v1703_v57 }
  0x77   :  { %1336 = vmatpush3.bf16.msra.mxu1 %v1983_v13 }
  0x78   :  { %1338 = vmatprep.subr.bf16.mxu1 %v1984_v1 }
  0x7b   :  { %1340 = vmatpush3.bf16.msra.mxu1 %v1985_v36 }
  0x7e   :  { %913 = vmatmul.mubr.f32.vlgmr.msra.gmra.mrb[4].mxu1 %v1703_v57 }
 0x108   :  { %v971_v41 = vpop.f32.mrb[0].mxu0 }
 0x109   :  { %v972_v53 = vpop.f32.mrb[1].mxu0 }
 0x10a   :  { %v973_v54 = vadd.f32 %v972_v53, %v971_v41 }
 0x10c   :  { %v165_v49 = vadd.f32 %v973_v54, %v938_v16 }
 0x111   :  { %v1006_v4 = vpop.f32.mrb[0].mxu1 }
 0x112   :  { %v1007_v48 = vpop.f32.mrb[1].mxu1 }
 0x113   :  { %v1008_v37 = vadd.f32 %v1007_v48, %v1006_v4 }
 0x115   :  { %v397_v34 = vadd.f32 %v1008_v37, %v165_v49 }
 0x128   :  { %v1041_v2 = vpop.f32.mrb[2].mxu0 }
 0x129   :  { %v1042_v47 = vpop.f32.mrb[3].mxu0 }
 0x12a   :  { %v1043_v31 = vadd.f32 %v1042_v47, %v1041_v2 }
 0x12c   :  { %v535_v32 = vadd.f32 %v1043_v31, %v397_v34 }
 0x131   :  { %v1076_v55 = vpop.f32.mrb[2].mxu1 }
 0x132   :  { %v1077_v15 = vpop.f32.mrb[3].mxu1 }
 0x133   :  { %v1078_v21 = vadd.f32 %v1077_v15, %v1076_v55 }
 0x135   :  { %v643_v57 = vadd.f32 %v1078_v21, %v535_v32 }
 0x148   :  { %v1111_v9 = vpop.f32.mrb[4].mxu0 }
 0x149   :  { %v1112_v25 = vpop.f32.mrb[5].mxu0 }
 0x14a   :  { %v1113_v26 = vadd.f32 %v1112_v25, %v1111_v9 }
 0x14c   :  { %v811_v59 = vadd.f32 %v1113_v26, %v643_v57 }
 0x151   :  { %v1146_v28 = vpop.f32.mrb[4].mxu1 }
 0x152   :  { %v1147_v38 = vpop.f32.mrb[5].mxu1 }
 0x153   :  { %v1148_v40 = vadd.f32 %v1147_v38, %v1146_v28 }
 0x155   :  { %v915_v43 = vadd.f32 %v1148_v40, %v811_v59 }
 0x157   :  { %v918_v24 = vmul.f32 0.5, %v915_v43 }
 0x159   :  { %1342 = vtanh.f32 %v918_v24 }
 0x163   :  { %v1343_v46 = vpop.eup %1342 }
 0x164   :  { %v920_v58 = vadd.f32 1.0, %v1343_v46 }
 0x166   :  { %v921_v3 = vmul.f32 0.5, %v920_v58 }
 0x168   :  { %923 = vst.msk [vmem:[#allocation2] sm:$0xff] %vm922_vm0, %v921_v3 }
 0x169   :  { %1355 = shalt.err (!%p1352_p4)
}
 0x16a   :  { %s1356_s30 = scalar_lea.hbm %s1907_s3, 128 }
 0x16b   :  { %p1357_p5 = scmp.ne.s32.totalorder %s1907_s3, %s1356_s30  ;;  %p1360_p6 = scmp.lt.u32.totalorder %s1356_s30, %s1907_s3 }
 0x16d   :  { %p1362_p7 = pnand %p1360_p6, %p1357_p5 }
 0x16f   :  { %1365 = shalt.err (!%p1362_p7)
}
 0x170   :  { %933 = dma.vmem_to_hbm [thread:$0]  %s931_s26, 128, %s1907_s3, [#allocation3]  }
 0x171   :  { %1366 = dma.done.wait [#allocation3], 128  }
 0x172   :  { %1367 = vsyncadd [#allocation3], 4294967168 }
 0x173   :  { %937 = vsyncpa [#allocation3], 1 }

</bundles_post_ra>
